<compile_context>
chip_gen: v7x
topology: tpu7x:2x2x1
jax: 0.10.0
libtpu: 0.0.40
codegen_flags: <defaults>
</compile_context>

<pallas_src>
import functools

import jax
import jax.numpy as jnp
from jax.experimental import pallas as pl
from jax.experimental.pallas import tpu as pltpu


def _round_up(v, m):
    return (v + m - 1) // m * m


def _sconv2_kernel(ker_ref, x_ref, out_ref, *, shifts, win_pad):
    """One grid step = one batch tile of `bt` images, one MXU matmul.

    ker_ref : (1, bt*oc, bt*kk*groups)  block-diagonal dynamic kernels (compute dtype)
    x_ref   : (1, bt*groups, L)         group-pre-summed, row-flattened padded images (f32)
    out_ref : (1, bt*oc, win_pad)       lane-dense (win_pad % 128 == 0) output slab
    """
    x = x_ref[0]                                             # (bt*groups, L)

    # im2col: every conv tap is a pure lane shift of the flattened image.
    # Row order = tap * (bt*groups) + image*groups + group (matches ker_blk columns).
    # One concat per grid step (not per image) -> one patch matrix feeding one dot.
    patches = jnp.concatenate([x[:, sh:sh + win_pad] for sh in shifts],
                              axis=0)                        # (bt*kk*groups, win_pad)

    # Whole grouped dynamic conv for the batch tile = one MXU matmul, bf16 in / f32 acc.
    res = jnp.dot(ker_ref[0], patches.astype(ker_ref.dtype),
                  preferred_element_type=jnp.float32)        # (bt*oc, win_pad)
    out_ref[0] = res.astype(out_ref.dtype)                   # unmasked lane-dense store


def sconv2_forward(x, representation, w_lin, *, in_channels, out_channels,
                   kernel_size, groups, batch_tile=None,
                   compute_dtype=jnp.bfloat16):
    b, c, h, w = x.shape
    assert c == in_channels
    assert in_channels % groups == 0 and out_channels % groups == 0
    k = kernel_size                      # module assumes odd kernel_size
    p = k // 2
    kk = k * k
    fpg = in_channels // groups
    opg = out_channels // groups
    hp, wp = h + 2 * p, w + 2 * p

    win = h * wp                                   # valid flat output row length
    win_pad = _round_up(win, 128)                  # [review #2] lane-dense output
    max_shift = (k - 1) * wp + (k - 1)
    L = _round_up(max(hp * wp, max_shift + win_pad), 128)   # lane-dense input rows

    # ---- [review #3/#8] batch tile: biggest divisor of b that keeps >=2 grid steps,
    # a reasonable block-diag K, and a modest per-step VMEM footprint.
    if batch_tile is None:
        batch_tile = 1
        for cand in range(1, b + 1):
            if b % cand != 0:
                continue
            if b // cand < 2 and b >= 2:
                continue                           # keep >=2 steps so DMA pipelines
            if cand * kk * groups > 256:
                continue                           # MXU contraction target (v6e/v7x)
            step_bytes = 2 * cand * (groups * L * 4 + out_channels * win_pad * 4)
            if step_bytes > (16 << 20):
                continue                           # VMEM headroom (v7x: 64 MiB total)
            batch_tile = cand
    bt = batch_tile
    assert b % bt == 0
    n_tiles = b // bt
    K = kk * bt * groups

    # ---- compress_key hoisted out of the kernel: one batched matmul + LeakyReLU(0.1).
    ker = representation.astype(jnp.float32) @ w_lin.astype(jnp.float32).T
    ker = jnp.where(ker > 0, ker, 0.1 * ker)                 # LeakyReLU(0.1) per module
    ker = ker.reshape(b, out_channels, kk)

    # Block-diagonal layout over (image-in-tile, group); column = t*bt*groups + bi*groups + g.
    ker_t = ker.reshape(n_tiles, bt, out_channels, kk)                       # (n,bi,o,t)
    eye_b = jnp.eye(bt, dtype=jnp.float32)                                   # (bi,bi2)
    g_oh = (jnp.arange(out_channels)[:, None] // opg
            == jnp.arange(groups)[None, :]).astype(jnp.float32)              # (o,g)
    ker_blk = (ker_t[:, :, :, :, None, None]
               * eye_b[None, :, None, None, :, None]
               * g_oh[None, None, :, None, None, :])          # (n, bi, o, t, bi2, g)
    ker_blk = ker_blk.reshape(n_tiles, bt * out_channels, K).astype(compute_dtype)

    # ---- reflection pad + row-flatten so conv taps become pure lane shifts,
    # then [review #1] pre-sum each group's input channels (the dynamic kernel is
    # shared across them, so conv(sum) == sum(conv)).
    x_pad = jnp.pad(x, ((0, 0), (0, 0), (p, p), (p, p)), mode="reflect")
    x_flat = x_pad.reshape(b, in_channels, hp * wp).astype(jnp.float32)
    x_flat = jnp.pad(x_flat, ((0, 0), (0, 0), (0, L - hp * wp)))
    s = x_flat.reshape(b, groups, fpg, L).sum(axis=2)         # (b, groups, L)
    s = s.reshape(n_tiles, bt * groups, L)

    shifts = tuple(dy * wp + dx for dy in range(k) for dx in range(k))

    # [review v6e/v7x] explicit VMEM budget: double-buffered blocks + patch temporary.
    step_bytes = (2 * (bt * groups * L * 4
                       + bt * out_channels * win_pad * x.dtype.itemsize
                       + bt * out_channels * K * jnp.dtype(compute_dtype).itemsize)
                  + K * win_pad * 4)
    vmem_limit = int(min(48 << 20, max(32 << 20, 4 * step_bytes)))

    kern = functools.partial(_sconv2_kernel, shifts=shifts, win_pad=win_pad)

    out3 = pl.pallas_call(
        kern,
        out_shape=jax.ShapeDtypeStruct((n_tiles, bt * out_channels, win_pad), x.dtype),
        grid_spec=pltpu.PrefetchScalarGridSpec(
            num_scalar_prefetch=0,
            grid=(n_tiles,),
            in_specs=[
                pl.BlockSpec((1, bt * out_channels, K),
                             lambda i: (i, 0, 0)),            # block-diag dynamic kernels
                pl.BlockSpec((1, bt * groups, L),
                             lambda i: (i, 0, 0)),            # pre-summed padded images
            ],
            out_specs=pl.BlockSpec((1, bt * out_channels, win_pad),
                                   lambda i: (i, 0, 0)),
        ),
        compiler_params=pltpu.CompilerParams(
            dimension_semantics=("parallel",),                # batch tiles independent
            vmem_limit_bytes=vmem_limit),
    )(ker_blk, s)

    # Drop the lane padding and the (wp - w) garbage columns, restore NCHW.
    out = out3.reshape(b, out_channels, win_pad)[:, :, :win]
    return out.reshape(b, out_channels, h, wp)[:, :, :, :w]


def sconv2_reference(x, representation, w_lin, *, in_channels, out_channels,
                     kernel_size, groups):
    """Pure-JAX replica of the PyTorch forward (for validation)."""
    b, c, h, w = x.shape
    p = kernel_size // 2
    xp = jnp.pad(x, ((0, 0), (0, 0), (p, p), (p, p)), mode="reflect")
    hp, wp = h + 2 * p, w + 2 * p
    ker = representation @ w_lin.T
    ker = jnp.where(ker > 0, ker, 0.1 * ker)                  # LeakyReLU(0.1)
    fpg = in_channels // groups
    ker = ker.reshape(b, out_channels, 1, kernel_size, kernel_size)
    ker = jnp.repeat(ker, fpg, axis=2)
    out = jax.lax.conv_general_dilated(
        xp.reshape(1, b * in_channels, hp, wp),
        ker.reshape(b * out_channels, fpg, kernel_size, kernel_size),
        window_strides=(1, 1), padding="VALID",
        dimension_numbers=("NCHW", "OIHW", "NCHW"),
        feature_group_count=b * groups)
    return out.reshape(b, out_channels, h, w)


if __name__ == "__main__":
    # Module config (kernel_size must be odd, as the PyTorch module implies).
    in_channels, out_channels, kernel_size, groups, rep_dim = 4, 4, 3, 2, 32
    b, h, w = 4, 16, 16        # b=4 -> 2 grid steps (pipelining / v7x core sharding)

    key = jax.random.PRNGKey(0)
    kx, kr, kw = jax.random.split(key, 3)
    x = jax.random.normal(kx, (b, in_channels, h, w), dtype=jnp.float32)
    rep = jax.random.normal(kr, (b, rep_dim), dtype=jnp.float32)
    # compress_key Linear weight: (out_channels*k*k, rep_dim), no bias.
    w_lin = 0.1 * jax.random.normal(
        kw, (out_channels * kernel_size * kernel_size, rep_dim), dtype=jnp.float32)

    ref = sconv2_reference(x, rep, w_lin, in_channels=in_channels,
                           out_channels=out_channels, kernel_size=kernel_size,
                           groups=groups)

    # Exact-layout check: f32 MXU operands must match the XLA conv reference tightly.
    out_f32 = sconv2_forward(x, rep, w_lin, in_channels=in_channels,
                             out_channels=out_channels, kernel_size=kernel_size,
                             groups=groups, compute_dtype=jnp.float32)
    out_f32 = jax.block_until_ready(out_f32)
    assert out_f32.shape == (b, out_channels, h, w), out_f32.shape
    if not jnp.allclose(out_f32, ref, atol=1e-3, rtol=1e-3):
        raise AssertionError("Pallas SConv2 (f32) output does not match reference")

    # Default perf path: bf16 MXU operands, f32 accumulate (looser tolerance).
    out = sconv2_forward(x, rep, w_lin, in_channels=in_channels,
                         out_channels=out_channels, kernel_size=kernel_size,
                         groups=groups)
    out = jax.block_until_ready(out)
    assert out.shape == (b, out_channels, h, w), out.shape
    if not jnp.allclose(out, ref, atol=1e-1, rtol=5e-2):
        raise AssertionError("Pallas SConv2 (bf16) output does not match reference")

    print("KERNEL_OK")
</pallas_src>

<mosaic_0001>
module attributes {stable_mosaic.version = 11 : i64} {
  func.func @_sconv2_kernel(%arg0: i32, %arg1: memref<1x8x36xf32, #tpu.memory_space<vmem>>, %arg2: memref<1x4x512xf32, #tpu.memory_space<vmem>>, %arg3: memref<1x8x384xf32, #tpu.memory_space<vmem>>) attributes {dimension_semantics = [#tpu.dimension_semantics<parallel>], iteration_bounds = array<i64: 2>, scalar_prefetch = 0 : i64, scratch_operands = 0 : i64, tpu.core_type = #tpu.core_type<tc>, window_params = [{transform_indices = @transform_0, window_bounds = array<i64: 1, 8, 36>}, {transform_indices = @transform_1, window_bounds = array<i64: 1, 4, 512>}, {transform_indices = @transform_2, window_bounds = array<i64: 1, 8, 384>}]} {
    %c0 = arith.constant 0 : index
    %c0_0 = arith.constant 0 : index
    %c0_1 = arith.constant 0 : index
    %0 = vector.load %arg2[%c0, %c0_0, %c0_1] : memref<1x4x512xf32, #tpu.memory_space<vmem>>, vector<1x4x512xf32>
    %1 = vector.shape_cast %0 : vector<1x4x512xf32> to vector<4x512xf32>
    %2 = vector.extract_strided_slice %1 {offsets = [0, 0], sizes = [4, 384], strides = [1, 1]} : vector<4x512xf32> to vector<4x384xf32>
    %3 = vector.extract_strided_slice %1 {offsets = [0, 1], sizes = [4, 384], strides = [1, 1]} : vector<4x512xf32> to vector<4x384xf32>
    %4 = vector.extract_strided_slice %1 {offsets = [0, 2], sizes = [4, 384], strides = [1, 1]} : vector<4x512xf32> to vector<4x384xf32>
    %5 = vector.extract_strided_slice %1 {offsets = [0, 18], sizes = [4, 384], strides = [1, 1]} : vector<4x512xf32> to vector<4x384xf32>
    %6 = vector.extract_strided_slice %1 {offsets = [0, 19], sizes = [4, 384], strides = [1, 1]} : vector<4x512xf32> to vector<4x384xf32>
    %7 = vector.extract_strided_slice %1 {offsets = [0, 20], sizes = [4, 384], strides = [1, 1]} : vector<4x512xf32> to vector<4x384xf32>
    %8 = vector.extract_strided_slice %1 {offsets = [0, 36], sizes = [4, 384], strides = [1, 1]} : vector<4x512xf32> to vector<4x384xf32>
    %9 = vector.extract_strided_slice %1 {offsets = [0, 37], sizes = [4, 384], strides = [1, 1]} : vector<4x512xf32> to vector<4x384xf32>
    %10 = vector.extract_strided_slice %1 {offsets = [0, 38], sizes = [4, 384], strides = [1, 1]} : vector<4x512xf32> to vector<4x384xf32>
    %11 = tpu.concatenate %2, %3, %4, %5, %6, %7, %8, %9, %10 in 0 : vector<4x384xf32>, vector<4x384xf32>, vector<4x384xf32>, vector<4x384xf32>, vector<4x384xf32>, vector<4x384xf32>, vector<4x384xf32>, vector<4x384xf32>, vector<4x384xf32> -> vector<36x384xf32>
    %c0_2 = arith.constant 0 : index
    %c0_3 = arith.constant 0 : index
    %c0_4 = arith.constant 0 : index
    %12 = vector.load %arg1[%c0_2, %c0_3, %c0_4] : memref<1x8x36xf32, #tpu.memory_space<vmem>>, vector<1x8x36xf32>
    %13 = vector.shape_cast %12 : vector<1x8x36xf32> to vector<8x36xf32>
    %cst = arith.constant dense<0.000000e+00> : vector<8x384xf32>
    %14 = tpu.matmul %13, %11, %cst {dimension_numbers = #tpu.dot_dimension_numbers<[1], [0], [0], [1], [0, 0, 1, 1], [], []>} : vector<8x36xf32>, vector<36x384xf32>, vector<8x384xf32> -> vector<8x384xf32>
    %c0_5 = arith.constant 0 : index
    %c0_6 = arith.constant 0 : index
    %c0_7 = arith.constant 0 : index
    %15 = vector.load %arg3[%c0_5, %c0_6, %c0_7] : memref<1x8x384xf32, #tpu.memory_space<vmem>>, vector<1x8x384xf32>
    %16 = vector.shape_cast %15 : vector<1x8x384xf32> to vector<8x384xf32>
    %17 = vector.shape_cast %14 : vector<8x384xf32> to vector<1x8x384xf32>
    tpu.vector_store %arg3[%c0_5, %c0_6, %c0_7], %17 {strides = array<i32>} : memref<1x8x384xf32, #tpu.memory_space<vmem>>, vector<1x8x384xf32>,
    return
  }
  func.func @transform_0(%arg0: i32) -> (i32, i32, i32) {
    %c0_i32 = arith.constant 0 : i32
    %c0_i32_0 = arith.constant 0 : i32
    %c0_i32_1 = arith.constant 0 : i32
    return %arg0, %c0_i32, %c0_i32_0 : i32, i32, i32
  }
  func.func @transform_1(%arg0: i32) -> (i32, i32, i32) {
    %c0_i32 = arith.constant 0 : i32
    %c0_i32_0 = arith.constant 0 : i32
    %c0_i32_1 = arith.constant 0 : i32
    return %arg0, %c0_i32, %c0_i32_0 : i32, i32, i32
  }
  func.func @transform_2(%arg0: i32) -> (i32, i32, i32) {
    %c0_i32 = arith.constant 0 : i32
    %c0_i32_0 = arith.constant 0 : i32
    %c0_i32_1 = arith.constant 0 : i32
    return %arg0, %c0_i32, %c0_i32_0 : i32, i32, i32
  }
}

</mosaic_0001>

<bundles_post_ra>
// kernel: tpu_custom_call.1
= control target key start
LH: loop header
LB: loop body
LE: loop exit
PB: predicated region body
PF: predicated region fallthrough
CT: control target
= control target key end

     0   :  { %7 = vsyncpa [#allocation3], 0  ;;  %s1223_s0 = inlined_call_operand.hbm [shape: f32[2,8,36], index: 0, kind: input, shape index: {}]   ;;  %s1224_s1 = inlined_call_operand.hbm [shape: f32[2,4,512], index: 1, kind: input, shape index: {}]   ;;  %s1225_s2 = inlined_call_operand.hbm [shape: f32[2,8,384], index: 2, kind: output, shape index: {}]  }
   0x1   :  { %9 = vsyncpa [#allocation3 + $0x1], 0 }
   0x2   :  { %10 = vsyncpa [#allocation6], 0 }
   0x3   :  { %12 = vsyncpa [#allocation6 + $0x1], 0 }
   0x4   :  { %13 = vsyncpa [#allocation4], 0 }
   0x5   :  { %15 = vsyncpa [#allocation4 + $0x1], 0  ;;  %s951_s9 = smov 0   ;;  %s953_s10 = smov 0  }
   0x6   :  { %s955_s11 = smov 0   ;;  %s957_s12 = smov 0  }
   0x7 LB: > { %s972_s13 = sadd.s32 4294967295, %s920_s12   ;;  %s599_s14 = sadd.s32 4294967294, %s920_s12   ;;  %s920_s12 = sphi %s957_s12, %s1244_s12   ;;  %s916_s11 = sphi %s955_s11, %s1243_s11   ;;  %s912_s10 = sphi %s953_s10, %s1242_s10   ;;  %s908_s9 = sphi %s951_s9, %s1241_s9  }
   0x8   : > { %s976_s15 = sadd.s32 1, %s920_s12   ;;  %s28_s16 = sadd.s32 1, %s916_s11 }
   0x9   : > { %s25_s17 = ssub.s32 %s920_s12, %s976_s15  ;;  %p35_p0 = scmp.ne.s32.totalorder %s916_s11, %s912_s10 }
   0xa   : > { %p26_p1 = scmp.eq.s32.totalorder %s25_s17, 0  ;;  %p36_p2 = scmp.eq.s32.totalorder %s920_s12, 0 }
   0xb   : > { %p41_p3 = scmp.ne.s32.totalorder %s912_s10, %s908_s9  ;;  %p42_p4 = scmp.eq.s32.totalorder %s972_s13, 0 }
   0xc   : > { %s988_s18 = scalar_select %p26_p1, %s916_s11, %s28_s16  }
   0xd   : > { %p990_p5 = por %p36_p2, %p35_p0  ;;  %p994_p6 = por %p42_p4, %p41_p3 }
   0xe   : > { %p91_p7 = scmp.eq.s32.totalorder %s972_s13, 1  ;;  %p97_p8 = scmp.eq.s32.totalorder %s599_s14, 1 }
   0xf   : > { %s1229_s20 = scalar_select %p994_p6, 1, 0 }
  0x10   : > { %p671_p10 = scmp.lt.s32.totalorder %s920_s12, 2  ;;  %p1001_p11 = por %p91_p7, %p35_p0 }
  0x11   : > { %p1005_p12 = por %p97_p8, %p41_p3  ;;  %s1010_s23 = sand.u32 1, %s916_s11  }
  0x12   : > { %s1230_s21 = scalar_select %p1001_p11, 1, 0 }
  0x13   : > { %s1231_s22 = scalar_select %p1005_p12, 1, 0 }
  0x14   : > { %s603_s24 = sshll.u32 %s920_s12, 7  ;;  %s602_s25 = sshll.u32 %s1010_s23, 3 }
  0x15   : > { %s1017_s28 = scalar_lea.hbm %s1223_s0, %s603_s24  ;;  %s121_s29 = scalar_lea.vmem [#allocation2], %s602_s25 }
  0x16   : > { %s128_s30 = sshll.u32 %s121_s29, 4  ;;  %p1021_p13 = pnand %p671_p10, %p990_p5  ;;  %s1025_s30 = int_to_ptr.vmem [resolvable:$true] %s128_s30 }
  0x17   : > { %s118_s4 = scalar_lea.sflag [#allocation3], %s1010_s23  ;;  %s790_s5 = scalar_lea.hbm %s1017_s28, 128 }
  0x18   : > { %p791_p2 = scmp.ne.s32.totalorder %s1017_s28, %s790_s5  ;;  %p792_p3 = pneg %p1021_p13 }
  0x19   : > { %s795_s8 = scalar_lea.hbm %s1223_s0, 256  ;;  %p796_p5 = scmp.lt.u32.totalorder %s1017_s28, %s1223_s0 }
  0x1a   : > { %p793_p4 = pnand %p792_p3, %p791_p2  ;;  %p797_p8 = scmp.lt.u32.totalorder %s795_s8, %s790_s5 }
  0x1b   : > { %p799_p9 = scmp.lt.u32.totalorder %s790_s5, %s1017_s28 }
  0x1c   : > { %p794_p7 = pneg %p793_p4  ;;  %p798_p10 = por %p797_p8, %p796_p5 }
  0x1e   : > { %p800_p0 = por %p799_p9, %p798_p10 }
  0x20   : > { %p801_p1 = pnand %p800_p0, %p794_p7 }
  0x22   : > { %804 = shalt.err (!%p801_p1)
}
  0x23   : > { %s805_s17 = scalar_lea.vmem %s1025_s30, 128  ;;  %s922_s19 = smov [#allocation2]  }
  0x24   : > { %p806_p2 = scmp.ne.s32.totalorder %s1025_s30, %s805_s17  ;;  %s810_s24 = sshll.u32 %s922_s19, 4  ;;  %s811_s24 = int_to_ptr.vmem [resolvable:$false] %s810_s24 }
  0x25   : > { %s812_s25 = scalar_lea.vmem %s811_s24, 256  ;;  %p813_p11 = scmp.lt.s32.totalorder %s1025_s30, %s811_s24 }
  0x26   : > { %p808_p4 = pnand %p806_p2, %p792_p3  ;;  %p814_p5 = scmp.lt.s32.totalorder %s812_s25, %s805_s17 }
  0x28   : > { %p809_p12 = pneg %p808_p4  ;;  %p815_p8 = por %p814_p5, %p813_p11 }
  0x2a   : > { %p816_p9 = pnand %p815_p8, %p809_p12 }
  0x2c   : > { %819 = shalt.err (!%p816_p9)
}
  0x2d   : > { %663 = dma.hbm_to_vmem [thread:$0]  (!%p1021_p13), %s1017_s28, 128, %s1025_s30, %s118_s4  }
  0x2e   : > { %p1233_p0 = scmp.lt.s32.totalorder %s920_s12, 3  ;;  %p1234_p1 = scmp.ge.s32.totalorder %s920_s12, 1 }
  0x2f   : > { %s604_s27 = sshll.u32 %s1010_s23, 4  ;;  %s618_s29 = sshll.u32 %s920_s12, 8 }
  0x30   : > { %p1059_p7 = pnand %p1234_p1, %p1233_p0  ;;  %s1068_s7 = scalar_lea.hbm %s1224_s1, %s618_s29 }
  0x31   : > { %s139_s8 = scalar_lea.vmem [#allocation5], %s604_s27  ;;  %s136_s28 = scalar_lea.sflag [#allocation6], %s1010_s23 }
  0x32   : > { %s1235_s26 = scalar_select %p1059_p7, 1, 0 }
  0x33   : > { %s147_s14 = sshll.u32 %s139_s8, 4  ;;  %s820_s30 = scalar_lea.hbm %s1068_s7, 256  ;;  %s148_s14 = int_to_ptr.vmem [resolvable:$true] %s147_s14 }
  0x34   : > { %p821_p11 = scmp.ne.s32.totalorder %s1068_s7, %s820_s30  ;;  %s825_s17 = scalar_lea.hbm %s1224_s1, 512 }
  0x35   : > { %p826_p2 = scmp.lt.u32.totalorder %s1068_s7, %s1224_s1  ;;  %p827_p4 = scmp.lt.u32.totalorder %s825_s17, %s820_s30 }
  0x36   : > { %p823_p12 = pnand %p821_p11, %p792_p3  ;;  %p829_p8 = scmp.lt.u32.totalorder %s820_s30, %s1068_s7 }
  0x37   : > { %p828_p5 = por %p827_p4, %p826_p2 }
  0x38   : > { %p824_p10 = pneg %p823_p12 }
  0x39   : > { %p830_p9 = por %p829_p8, %p828_p5 }
  0x3b   : > { %p831_p0 = pnand %p830_p9, %p824_p10 }
  0x3d   : > { %834 = shalt.err (!%p831_p0)
}
  0x3e   : > { %s835_s23 = scalar_lea.vmem %s148_s14, 256  ;;  %s923_s25 = smov [#allocation5]  }
  0x3f   : > { %p836_p1 = scmp.ne.s32.totalorder %s148_s14, %s835_s23  ;;  %s840_s27 = sshll.u32 %s923_s25, 4  ;;  %s841_s27 = int_to_ptr.vmem [resolvable:$false] %s840_s27 }
  0x40   : > { %s842_s29 = scalar_lea.vmem %s841_s27, 512  ;;  %p843_p6 = scmp.lt.s32.totalorder %s148_s14, %s841_s27 }
  0x41   : > { %p838_p11 = pnand %p836_p1, %p792_p3  ;;  %p844_p7 = scmp.lt.s32.totalorder %s842_s29, %s835_s23 }
  0x43   : > { %p839_p12 = pneg %p838_p11  ;;  %p845_p2 = por %p844_p7, %p843_p6 }
  0x45   : > { %p846_p4 = pnand %p845_p2, %p839_p12 }
  0x47   : > { %849 = shalt.err (!%p846_p4)
}
  0x48   : > { %666 = dma.hbm_to_vmem [thread:$0]  (!%p1021_p13), %s1068_s7, 256, %s148_s14, %s136_s28  }
  0x49   : > { %p1236_p10 = scmp.ne.s32.totalorder %s1235_s26, 0 }
  0x4a   : > { %s1093_s5 = sand.u32 (!%p1236_p10), 1, %s912_s10   ;;  %p1237_p6 = scmp.ne.s32.totalorder (!%p1236_p10), %s1229_s20, 0 }
  0x4b   : > { %156 = sbr.rel (%p1236_p10) target bundleno = 468 (0x1d4), region = 28  ;;  %s608_s6 = sshll.u32 (!%p1236_p10), %s1093_s5, 3 }
  0x4c   : > { %s159_s8 = scalar_lea.sflag (!%p1236_p10), [#allocation3], %s1093_s5  ;;  %s1097_s30 = scalar_lea.vmem (!%p1236_p10), [#allocation2], %s608_s6 }
  0x52   : > { %895 = dma.done.wait (%p1237_p6), %s159_s8, 128  }
  0x53   : > { %897 = vsyncadd (%p1237_p6), %s159_s8, 4294967168  ;;  %s609_s3 = sshll.u32 %s1093_s5, 4  ;;  %s168_s26 = scalar_lea.sflag [#allocation6], %s1093_s5 }
  0x54   : > { %s171_s7 = scalar_lea.vmem [#allocation5], %s609_s3 }
  0x55   : > { %899 = dma.done.wait (%p1237_p6), %s168_s26, 256  }
  0x56   : > { %901 = vsyncadd (%p1237_p6), %s168_s26, 4294967040  ;;  %v1109_v0 = vld [vmem:[%s171_s7] sm:$0xff]  ;;  %v1111_v1 = vld [vmem:[%s171_s7 + $0x8] sm:$0xff]  ;;  %s924_s14 = smov 110   ;;  %s925_s28 = smov 127   ;;  %v926_v9 = vmov 0.0|0.0  }
  0x57   : > { %v204_v2 = vcombine.low %v1111_v1, %v1111_v1  ;;  %v203_v3 = vcombine.low %v1109_v0, %v1109_v0  ;;  %v201_v4 = vcombine.high %v1109_v0, %v1109_v0  ;;  %v220_v8 = vcombine.high %v1111_v1, %v1111_v1  ;;  %646 = vmatprep.subr.bf16.mxu1 %v926_v9  ;;  %s927_s20 = smov 126   ;;  %s928_s4 = smov 108  }
  0x58   : > { %s929_s16 = smov 109   ;;  %s930_s17 = smov 91   ;;  %v932_v11 = vmov 0.0   ;;  %vm933_vm0 = vmmov 0   ;;  %vm213_vm1 = vcmask 1039360   ;;  %vm229_vm2 = vcmask 1031168  }
  0x59   : > { %v726_v5 = vpack.i.bf16 %v204_v2, %v1109_v0  ;;  %v731_v6 = vpack.i.bf16 %v1111_v1, %v203_v3  ;;  %v721_v7 = vpack.i.bf16 %v1111_v1, %v201_v4  ;;  %v736_v10 = vpack.i.bf16 %v220_v8, %v1109_v0  ;;  %s931_s19 = smov 92   ;;  %411 = vmatprep.mubr.f32.mxu0 %v932_v11  ;;  %s934_s24 = smov 90  }
  0x5a   : > { %635 = vmatprep.mubr.msk.f32.mxu1 %vm933_vm0, %v932_v11  ;;  %vm244_vm3 = vcmask 900096   ;;  %vm323_vm4 = vcmask 1043456   ;;  %vm274_vm5 = vcmask 883712   ;;  %vm259_vm6 = vcmask 891904   ;;  %s652_s23 = smul.u32 24, %s1093_s5  ;;  %s492_s3 = scalar_lea.sflag [#allocation4], %s1093_s5 }
  0x5b   : > { %727 = vrot.lane.b32.xlu1 %v726_v5, %s924_s14  ;;  %717 = vrot.lane.b32.xlu0 %v726_v5, %s925_s28  ;;  %vm304_vm7 = vcmask 744448   ;;  %vm289_vm8 = vcmask 752640   ;;  %vm319_vm9 = vcmask 736256   ;;  %vm337_vm10 = vcmask 293888   ;;  %s653_s29 = smul.u32 384, %s972_s13  ;;  %p1238_p3 = scmp.ne.s32.totalorder %s1230_s21, 0 }
  0x5c   : > { %s196_s25 = scalar_lea.vmem [#allocation7], %s652_s23  ;;  %s935_s13 = smov [#allocation7]  }
  0x5d   : > { %s506_s27 = sshll.u32 %s196_s25, 4  ;;  %s854_s7 = sshll.u32 %s935_s13, 4  ;;  %s1176_s27 = int_to_ptr.vmem [resolvable:$true] %s506_s27  ;;  %s855_s7 = int_to_ptr.vmem [resolvable:$false] %s854_s7 }
  0x5e   : > { %s850_s26 = scalar_lea.vmem %s1176_s27, 384  ;;  %p857_p8 = scmp.lt.s32.totalorder %s1176_s27, %s855_s7 }
  0x5f   : > { %732 = vrot.lane.b32.xlu1 %v731_v6, %s925_s28  ;;  %722 = vrot.lane.b32.xlu0 %v721_v7, %s927_s20  ;;  %p851_p13 = scmp.ne.s32.totalorder %s1176_s27, %s850_s26 }
  0x61   : > { %p852_p7 = pnand %p851_p13, %p1238_p3 }
  0x63   : > { %742 = vrot.lane.b32.xlu1 %v731_v6, %s924_s14  ;;  %737 = vrot.lane.b32.xlu0 %v736_v10, %s927_s20  ;;  %p853_p5 = pneg %p852_p7  ;;  %s856_s14 = scalar_lea.vmem %s855_s7, 768 }
  0x64   : > { %p858_p9 = scmp.lt.s32.totalorder %s856_s14, %s850_s26 }
  0x66   : > { %p859_p0 = por %p858_p9, %p857_p8 }
  0x67   : > { %752 = vrot.lane.b32.xlu1 %v726_v5, %s928_s4  ;;  %747 = vrot.lane.b32.xlu0 %v721_v7, %s929_s16 }
  0x68   : > { %p860_p1 = pnand %p859_p0, %p853_p5 }
  0x6b   : > { %762 = vrot.lane.b32.xlu1 %v726_v5, %s930_s17  ;;  %757 = vrot.lane.b32.xlu0 %v721_v7, %s931_s19 }
  0x6f   : > { %772 = vrot.lane.b32.xlu1 %v731_v6, %s928_s4  ;;  %767 = vrot.lane.b32.xlu0 %v736_v10, %s929_s16 }
  0x73   : > { %782 = vrot.lane.b32.xlu1 %v731_v6, %s930_s17  ;;  %777 = vrot.lane.b32.xlu0 %v736_v10, %s931_s19 }
  0x77   : > { %315 = vrot.lane.b32.xlu1 %v1111_v1, %s934_s24  ;;  %313 = vrot.lane.b32.xlu0 %v201_v4, %s934_s24 }
  0x7b   : > { %317 = vrot.lane.b32.xlu1 %v220_v8, %s934_s24  ;;  %311 = vrot.lane.b32.xlu0 %v1109_v0, %s934_s24 }
  0xcd   : > { %v728_v12 = vpop.permute.xlu1 %727  ;;  %v718_v13 = vpop.permute.xlu0 %717 }
  0xce   : > { %v720_v14 = vunpack.i.h.bf16 %v718_v13  ;;  %v719_v15 = vunpack.i.l.bf16 %v718_v13  ;;  %v730_v16 = vunpack.i.h.bf16 %v728_v12  ;;  %v729_v17 = vunpack.i.l.bf16 %v728_v12 }
  0xd0   : > { %v215_v20 = vsel %vm213_vm1, %v719_v15, %v720_v14  ;;  %v246_v26 = vsel %vm244_vm3, %v729_v17, %v730_v16 }
  0xd1   : > { %v733_v18 = vpop.permute.xlu1 %732  ;;  %v723_v19 = vpop.permute.xlu0 %722  ;;  %v325_v29 = vsel %vm323_vm4, %v201_v4, %v215_v20 }
  0xd2   : > { %v735_v21 = vunpack.i.h.bf16 %v733_v18  ;;  %v734_v22 = vunpack.i.l.bf16 %v733_v18  ;;  %v725_v23 = vunpack.i.h.bf16 %v723_v19  ;;  %v724_v24 = vunpack.i.l.bf16 %v723_v19 }
  0xd4   : > { %v231_v25 = vsel %vm229_vm2, %v724_v24, %v725_v23  ;;  %v214_v31 = vsel %vm213_vm1, %v734_v22, %v719_v15  ;;  %v216_v32 = vsel %vm213_vm1, %v720_v14, %v735_v21 }
  0xd5   : > { %v743_v27 = vpop.permute.xlu1 %742  ;;  %v738_v28 = vpop.permute.xlu0 %737  ;;  %v328_v30 = vsel %vm323_vm4, %v231_v25, %v246_v26  ;;  %v324_v44 = vsel %vm323_vm4, %v1109_v0, %v214_v31  ;;  %v326_v46 = vsel %vm323_vm4, %v1111_v1, %v216_v32 }
  0xd6   : > { %v745_v33 = vunpack.i.h.bf16 %v743_v27  ;;  %v744_v34 = vunpack.i.l.bf16 %v743_v27  ;;  %v740_v35 = vunpack.i.h.bf16 %v738_v28  ;;  %v739_v36 = vunpack.i.l.bf16 %v738_v28 }
  0xd7   : > { %v638_v37 = vpack.c.bf16 %v328_v30, %v325_v29 }
  0xd8   : > { %v230_v38 = vsel %vm229_vm2, %v739_v36, %v724_v24  ;;  %v245_v39 = vsel %vm244_vm3, %v744_v34, %v729_v17  ;;  %v232_v40 = vsel %vm229_vm2, %v725_v23, %v740_v35  ;;  %v247_v41 = vsel %vm244_vm3, %v730_v16, %v745_v33 }
  0xd9   : > { %639 = vmatprep.subr.bf16.mxu0 %v638_v37  ;;  %v753_v42 = vpop.permute.xlu1 %752  ;;  %v748_v43 = vpop.permute.xlu0 %747  ;;  %v327_v45 = vsel %vm323_vm4, %v230_v38, %v245_v39  ;;  %v329_v47 = vsel %vm323_vm4, %v232_v40, %v247_v41  ;;  %v336_v37 = vld [vmem:[%s1097_s30] sm:$0xff]  ;;  %s1181_s30 = scalar_lea.hbm %s1225_s2, %s653_s29 }
  0xda   : > { %v755_v48 = vunpack.i.h.bf16 %v753_v42  ;;  %v754_v49 = vunpack.i.l.bf16 %v753_v42  ;;  %v750_v50 = vunpack.i.h.bf16 %v748_v43  ;;  %v749_v51 = vunpack.i.l.bf16 %v748_v43 }
  0xdb   : > { %v640_v52 = vpack.c.bf16 %v327_v45, %v324_v44  ;;  %v647_v53 = vpack.c.bf16 %v329_v47, %v326_v46 }
  0xdc   : > { %v276_v54 = vsel %vm274_vm5, %v754_v49, %v755_v48  ;;  %v261_v55 = vsel %vm259_vm6, %v749_v51, %v750_v50 }
  0xdd   : > { %641 = vmatpush1.bf16.msra.mxu0 %v640_v52  ;;  %648 = vmatpush3.bf16.msra.mxu1 %v647_v53  ;;  %v763_v56 = vpop.permute.xlu1 %762  ;;  %v758_v57 = vpop.permute.xlu0 %757  ;;  %v331_v2 = vsel %vm323_vm4, %v261_v55, %v276_v54 }
  0xde   : > { %v765_v58 = vunpack.i.h.bf16 %v763_v56  ;;  %v764_v59 = vunpack.i.l.bf16 %v763_v56  ;;  %v760_v60 = vunpack.i.h.bf16 %v758_v57  ;;  %v759_v61 = vunpack.i.l.bf16 %v758_v57  ;;  %649 = vmatprep.subr.bf16.mxu1 %v926_v9 }
  0xe0   : > { %v306_v62 = vsel %vm304_vm7, %v764_v59, %v765_v58  ;;  %v291_v63 = vsel %vm289_vm8, %v759_v61, %v760_v60 }
  0xe1   : > { %v773_v0 = vpop.permute.xlu1 %772  ;;  %v768_v1 = vpop.permute.xlu0 %767  ;;  %v334_v3 = vsel %vm323_vm4, %v291_v63, %v306_v62 }
  0xe2   : > { %v775_v4 = vunpack.i.h.bf16 %v773_v0  ;;  %v774_v5 = vunpack.i.l.bf16 %v773_v0  ;;  %v770_v6 = vunpack.i.h.bf16 %v768_v1  ;;  %v769_v7 = vunpack.i.l.bf16 %v768_v1 }
  0xe3   : > { %v642_v8 = vpack.c.bf16 %v334_v3, %v331_v2 }
  0xe4   : > { %v275_v10 = vsel %vm274_vm5, %v774_v5, %v754_v49  ;;  %v277_v12 = vsel %vm274_vm5, %v755_v48, %v775_v4  ;;  %v260_v9 = vsel %vm259_vm6, %v769_v7, %v749_v51  ;;  %v262_v13 = vsel %vm259_vm6, %v750_v50, %v770_v6 }
  0xe5   : > { %643 = vmatprep.subr.bf16.mxu0 %v642_v8  ;;  %v783_v14 = vpop.permute.xlu1 %782  ;;  %v778_v15 = vpop.permute.xlu0 %777  ;;  %v330_v26 = vsel %vm323_vm4, %v260_v9, %v275_v10  ;;  %v332_v28 = vsel %vm323_vm4, %v262_v13, %v277_v12 }
  0xe6   : > { %v785_v16 = vunpack.i.h.bf16 %v783_v14  ;;  %v784_v17 = vunpack.i.l.bf16 %v783_v14  ;;  %v780_v18 = vunpack.i.h.bf16 %v778_v15  ;;  %v779_v19 = vunpack.i.l.bf16 %v778_v15 }
  0xe8   : > { %v305_v20 = vsel %vm304_vm7, %v784_v17, %v764_v59  ;;  %v307_v21 = vsel %vm304_vm7, %v765_v58, %v785_v16  ;;  %v290_v22 = vsel %vm289_vm8, %v779_v19, %v759_v61  ;;  %v292_v23 = vsel %vm289_vm8, %v760_v60, %v780_v18 }
  0xe9   : > { %v316_v24 = vpop.permute.xlu1 %315  ;;  %v314_v25 = vpop.permute.xlu0 %313  ;;  %v333_v27 = vsel %vm323_vm4, %v290_v22, %v305_v20  ;;  %v335_v29 = vsel %vm323_vm4, %v292_v23, %v307_v21 }
  0xea   : > { %v321_v30 = vsel %vm319_vm9, %v314_v25, %v316_v24  ;;  %v644_v31 = vpack.c.bf16 %v333_v27, %v330_v26  ;;  %v650_v32 = vpack.c.bf16 %v335_v29, %v332_v28 }
  0xec   : > { %645 = vmatpush1.bf16.msra.mxu0 %v644_v31  ;;  %651 = vmatpush3.bf16.msra.mxu1 %v650_v32 }
  0xed   : > { %v318_v33 = vpop.permute.xlu1 %317  ;;  %v312_v34 = vpop.permute.xlu0 %311  ;;  %610 = vmatprep.subr.msk.mxu0 %vm323_vm4, %v321_v30  ;;  %633 = vmatprep.subr.mxu1 %v932_v11 }
  0xee   : > { %v322_v35 = vsel %vm319_vm9, %v316_v24, %v318_v33  ;;  %v320_v36 = vsel %vm319_vm9, %v312_v34, %v314_v25 }
  0xf0   : > { %611 = vmatpush1.msk.msra.mxu0 %vm323_vm4, %v320_v36  ;;  %634 = vmatpush3.msk.msra.mxu1 %vm323_vm4, %v322_v35 }
  0xf1   : > { %612 = vmatmul.mubr.msk.f32.vlgmr.msra.gmra.mrb[0].mxu0 %vm337_vm10, %v336_v37  ;;  %636 = vmatmul.mubr.msk.f32.vlgmr.msra.gmra.mrb[0].mxu1 %vm337_vm10, %v336_v37 }
 0x1c4   : > { %v413_v11 = vpop.f32.mrb[0].mxu0  ;;  %v484_v38 = vpop.f32.mrb[0].mxu1 }
 0x1c5   : > { %488 = vst [vmem:[%s196_s25] sm:$0xff] %v413_v11  ;;  %490 = vst [vmem:[%s196_s25 + $0x10] sm:$0xff] %v484_v38  ;;  %v415_v39 = vpop.f32.mrb[1].mxu0  ;;  %v637_v40 = vpop.f32.mrb[1].mxu1 }
 0x1c6   : > { %489 = vst [vmem:[%s196_s25 + $0x8] sm:$0xff] %v415_v39 }
 0x1c7   : > { %863 = shalt.err (!%p860_p1)
}
 0x1c8   : > { %s864_s5 = scalar_lea.hbm %s1181_s30, 384  ;;  %s868_s4 = scalar_lea.hbm %s1225_s2, 768 }
 0x1c9   : > { %p865_p11 = scmp.ne.s32.totalorder %s1181_s30, %s864_s5  ;;  %p869_p4 = scmp.lt.u32.totalorder %s1181_s30, %s1225_s2 }
 0x1ca   : > { %p870_p10 = scmp.lt.u32.totalorder %s868_s4, %s864_s5  ;;  %p872_p13 = scmp.lt.u32.totalorder %s864_s5, %s1181_s30 }
 0x1cb   : > { %p866_p12 = pnand %p865_p11, %p1238_p3 }
 0x1cc   : > { %p871_p6 = por %p870_p10, %p869_p4 }
 0x1cd   : > { %p867_p2 = pneg %p866_p12 }
 0x1ce   : > { %p873_p7 = por %p872_p13, %p871_p6 }
 0x1d0   : > { %p874_p5 = pnand %p873_p7, %p867_p2 }
 0x1d2   : > { %877 = shalt.err (!%p874_p5)
}
 0x1d3   : > { %658 = dma.vmem_to_hbm [thread:$0]  (%p1238_p3), %s1176_s27, 384, %s1181_s30, %s492_s3  }
 0x1d4 PF: > { %s518_s19 = sand.u32 1, %s908_s9   ;;  %p1239_p8 = scmp.ne.s32.totalorder %s1231_s22, 0 }
 0x1d5   : > { %p1240_p9 = scmp.ge.s32.totalorder %s920_s12, 2  ;;  %s519_s24 = scalar_lea.sflag [#allocation4], %s518_s19 }
 0x1d7   : > { %p668_p0 = pnand %p1240_p9, %p1239_p8 }
 0x1d9   : > { %903 = dma.done.wait (!%p668_p0), %s519_s24, 384  }
 0x1da   : > { %905 = vsyncadd (!%p668_p0), %s519_s24, 4294966912  ;;  %p18_p1 = scmp.ge.s32.totalorder %s976_s15, 4   ;;  %s1241_s9 = smov %s912_s10 }
 0x1db   : > { %s1242_s10 = smov %s916_s11  ;;  %s1243_s11 = smov %s988_s18 }
 0x1dc   : > { %s1244_s12 = smov %s976_s15  ;;  %20 = sbr.rel (!%p18_p1) target bundleno = 7 (0x7), region = 86 }
 0x1e3   :  { %524 = vsyncpa [#allocation3], 1 }
 0x1e4   :  { %526 = vsyncpa [#allocation3 + $0x1], 1 }
 0x1e5   :  { %527 = vsyncpa [#allocation6], 1 }
 0x1e6   :  { %529 = vsyncpa [#allocation6 + $0x1], 1 }
 0x1e7   :  { %530 = vsyncpa [#allocation4], 1 }
 0x1e8   :  { %532 = vsyncpa [#allocation4 + $0x1], 1 }

</bundles_post_ra>
